<compile_context>
chip_gen: v5e
topology: v5e:2x2
jax: 0.10.0
libtpu: 0.0.40
codegen_flags: <defaults>
</compile_context>

<pallas_src>
import jax
import jax.numpy as jnp
from jax.experimental import pallas as pl
from jax.experimental.pallas import tpu as pltpu


def bilstm_pool_kernel(lens_ref,                 # SMEM (B,) int32 (scalar prefetch)
                       x_ref,                    # VMEM (T, Bt, D) f32, time-major
                       w_in_ref, b_in_ref,       # (D, 8H) bf16, (1, 8H) f32
                       whh_f_ref, whh_b_ref,     # (H, 4H) bf16 each
                       wnl_ref, bnl_ref,         # (2H, 2) f32, (1, 2) f32
                       out_ref,                  # VMEM (Bt, 2) f32
                       gxf_ref, gxb_ref):        # VMEM (T, Bt, 4H) f32 scratch
    T, Bt, D = x_ref.shape
    H = whh_f_ref.shape[0]
    base = pl.program_id(0) * Bt

    # ---- control data from SMEM: block max length + per-row length vector ----
    t_max = lens_ref[base]
    for i in range(1, Bt):
        t_max = jnp.maximum(t_max, lens_ref[base + i])
    row_ids = jax.lax.broadcasted_iota(jnp.int32, (Bt, 1), 0)
    lens_vec = jnp.zeros((Bt, 1), jnp.int32)
    for i in range(Bt):
        lens_vec = jnp.where(row_ids == i, lens_ref[base + i], lens_vec)

    # ---- hoisted weight loads (no per-iteration Ref reads) ----
    whh_f = whh_f_ref[...]        # bf16 (H, 4H)
    whh_b = whh_b_ref[...]

    # ---- one batched input projection for both directions, biases folded in ----
    x2 = x_ref[...].astype(jnp.bfloat16).reshape(T * Bt, D)
    gx = jnp.dot(x2, w_in_ref[...], preferred_element_type=jnp.float32) + b_in_ref[...]
    gx = gx.reshape(T, Bt, 8 * H)
    gxf_ref[...] = gx[:, :, :4 * H]          # forward gates,  columns (i, f, o, g)
    gxb_ref[...] = gx[:, :, 4 * H:]          # backward gates, columns (i, f, o, g)

    def lstm_cell(gates, c):
        # gates: (Bt, 4H) pre-activations, column order (i, f, o, g)
        sig = jax.nn.sigmoid(gates[:, :3 * H])     # one EUP pass over 3H lanes
        g = jnp.tanh(gates[:, 3 * H:])             # one EUP pass over H lanes
        i_g = sig[:, :H]
        f_g = sig[:, H:2 * H]
        o_g = sig[:, 2 * H:3 * H]
        c_new = f_g * c + i_g * g
        h_new = o_g * jnp.tanh(c_new)
        return h_new, c_new

    zeros_h = jnp.zeros((Bt, H), jnp.float32)
    neg_inf = jnp.full((Bt, H), -jnp.inf, jnp.float32)
    t_hi = t_max - 1

    def step(t, carry):
        h_f, c_f, h_b, c_b, p_f, p_b = carry

        # forward chain, timestep t
        gates_f = gxf_ref[t] + jnp.dot(h_f.astype(jnp.bfloat16), whh_f,
                                       preferred_element_type=jnp.float32)
        hf_new, cf_new = lstm_cell(gates_f, c_f)
        m_f = t < lens_vec                          # strict t < len (pack semantics)
        h_f = jnp.where(m_f, hf_new, h_f)
        c_f = jnp.where(m_f, cf_new, c_f)
        p_f = jnp.maximum(p_f, jnp.where(m_f, hf_new, 0.0))

        # backward chain, timestep t_hi - t (independent recurrence; interleaved
        # so one direction's MXU/EUP latency hides under the other's)
        tb = t_hi - t
        gates_b = gxb_ref[tb] + jnp.dot(h_b.astype(jnp.bfloat16), whh_b,
                                        preferred_element_type=jnp.float32)
        hb_new, cb_new = lstm_cell(gates_b, c_b)
        m_b = tb < lens_vec
        h_b = jnp.where(m_b, hb_new, h_b)
        c_b = jnp.where(m_b, cb_new, c_b)
        p_b = jnp.maximum(p_b, jnp.where(m_b, hb_new, 0.0))
        return (h_f, c_f, h_b, c_b, p_f, p_b)

    carry = (zeros_h, zeros_h, zeros_h, zeros_h, neg_inf, neg_inf)
    _, _, _, _, p_f, p_b = jax.lax.fori_loop(0, t_max, step, carry)

    # pad_packed_sequence zero-fills t >= len; those zeros take part in the
    # reference max_pool1d for every sequence shorter than the padded length T.
    has_pad = lens_vec < T
    p_f = jnp.where(has_pad, jnp.maximum(p_f, 0.0), p_f)
    p_b = jnp.where(has_pad, jnp.maximum(p_b, 0.0), p_b)

    pooled = jnp.concatenate([p_f, p_b], axis=1)            # (Bt, 2H)
    # accu_x = tanh(nonLinear(pooled))  (nonLinear applied twice in the reference,
    # first result overwritten -> net effect is tanh(linear(x)))
    out_ref[...] = jnp.tanh(
        jnp.dot(pooled, wnl_ref[...], preferred_element_type=jnp.float32)
        + bnl_ref[...])


def bilstm_forward(word, sentence_length, params, *, batch_block=8):
    """word: (B, T) int32 token ids, sentence_length: (B,) int32."""
    # prepare_pack_padded_sequence sorts by length and x[desorted_indices] later
    # restores the original order -> net identity on batch order; handled by masking.
    emb = params["embed_w"][word]                   # (B, T, D) embedding gather (glue)
    # dropout_embed / dropout: identity in eval mode
    B, T, D = emb.shape
    H = params["whh_f"].shape[0]
    emb_tm = jnp.transpose(emb, (1, 0, 2))          # time-major (T, B, D)
    lens = sentence_length.astype(jnp.int32)

    if B % batch_block == 0 and (batch_block % 8 == 0 or batch_block == B):
        Bt = batch_block
    else:
        Bt = B                                      # fall back to a single block

    grid_spec = pltpu.PrefetchScalarGridSpec(
        num_scalar_prefetch=1,                      # lens -> SMEM, control only
        grid=(B // Bt,),
        in_specs=[
            pl.BlockSpec((T, Bt, D), lambda b, lens_ref: (0, b, 0)),
            pl.BlockSpec((D, 8 * H), lambda b, lens_ref: (0, 0)),
            pl.BlockSpec((1, 8 * H), lambda b, lens_ref: (0, 0)),
            pl.BlockSpec((H, 4 * H), lambda b, lens_ref: (0, 0)),
            pl.BlockSpec((H, 4 * H), lambda b, lens_ref: (0, 0)),
            pl.BlockSpec((2 * H, 2), lambda b, lens_ref: (0, 0)),
            pl.BlockSpec((1, 2), lambda b, lens_ref: (0, 0)),
        ],
        out_specs=pl.BlockSpec((Bt, 2), lambda b, lens_ref: (b, 0)),
        scratch_shapes=[
            pltpu.VMEM((T, Bt, 4 * H), jnp.float32),   # forward  gate projections
            pltpu.VMEM((T, Bt, 4 * H), jnp.float32),   # backward gate projections
        ],
    )

    accu_x = pl.pallas_call(
        bilstm_pool_kernel,
        out_shape=jax.ShapeDtypeStruct((B, 2), jnp.float32),
        grid_spec=grid_spec,
        compiler_params=pltpu.CompilerParams(
            dimension_semantics=("parallel",)),
    )(lens, emb_tm,
      params["w_in"], params["b_in"],
      params["whh_f"], params["whh_b"],
      params["wnl"], params["bnl"])

    # accu_forward, reachable part: x.unsqueeze(1).repeat(1, label_num, 1)
    C = params["accu_weight"].shape[0]
    accu_rep = jnp.tile(accu_x[:, None, :], (1, C, 1))   # (B, C, 2)
    # TODO(synk): the remainder of accu_forward calls print()/exit() and then
    # torch.mul(x, accu_weight) with incompatible shapes (B,C,2)*(C,200); it is
    # unreachable and ill-formed in the reference, so it is not implemented.
    return accu_x, accu_rep


def init_params(key, V, D, C, H, padding_id):
    ks = jax.random.split(key, 12)
    s_lstm = 1.0 / float(H) ** 0.5

    def u(k, shape, s):
        return jax.random.uniform(k, shape, jnp.float32, -s, s)

    embed_w = u(ks[0], (V, D), 0.5).at[padding_id].set(0.0)   # padding_idx row zeroed

    # PyTorch LSTM params (one layer, bidirectional), gate row order (i, f, g, o)
    wih_f = u(ks[1], (4 * H, D), s_lstm)
    whh_f = u(ks[2], (4 * H, H), s_lstm)
    b_f = u(ks[3], (4 * H,), s_lstm) + u(ks[4], (4 * H,), s_lstm)   # b_ih + b_hh
    wih_b = u(ks[5], (4 * H, D), s_lstm)
    whh_b = u(ks[6], (4 * H, H), s_lstm)
    b_b = u(ks[7], (4 * H,), s_lstm) + u(ks[8], (4 * H,), s_lstm)

    def reorder(w):   # (i, f, g, o) -> (i, f, o, g) along the leading 4H axis
        return jnp.concatenate([w[:2 * H], w[3 * H:], w[2 * H:3 * H]], axis=0)

    # fused input projection for both directions: (D, 8H) = [fwd 4H | bwd 4H]
    w_in = jnp.concatenate([reorder(wih_f).T, reorder(wih_b).T], axis=1)
    b_in = jnp.concatenate([reorder(b_f), reorder(b_b)]).reshape(1, 8 * H)

    s_nl = 1.0 / float(2 * H) ** 0.5
    wnl = u(ks[9], (2, 2 * H), s_nl)                                # nonLinear
    bnl = u(ks[10], (2,), s_nl)
    accu_weight = jax.random.normal(ks[11], (C, 200), jnp.float32)  # accu_embed.weight
    return dict(
        embed_w=embed_w,
        w_in=w_in.astype(jnp.bfloat16),            # MXU operands in bf16, f32 accumulate
        b_in=b_in,
        whh_f=reorder(whh_f).T.astype(jnp.bfloat16),
        whh_b=reorder(whh_b).T.astype(jnp.bfloat16),
        wnl=wnl.T, bnl=bnl.reshape(1, 2),
        accu_weight=accu_weight,
    )


if __name__ == "__main__":
    # small config consistent with the module's kwargs:
    # embed_num=50, embed_dim=16, label_num=4, lstm_hiddens=32, lstm_layers=1,
    # paddingId=0, dropout=dropout_emb=0 (eval), pretrained_embed=False
    V, D, C, H = 50, 16, 4, 32
    B, T = 16, 8                 # B=16 -> two batch blocks of 8 on the parallel grid
    padding_id = 0

    key = jax.random.PRNGKey(0)
    pkey, wkey, lkey = jax.random.split(key, 3)
    params = init_params(pkey, V, D, C, H, padding_id)

    sentence_length = jax.random.randint(lkey, (B,), 1, T + 1, dtype=jnp.int32)
    sentence_length = sentence_length.at[0].set(T)   # at least one full-length sequence
    word = jax.random.randint(wkey, (B, T), 1, V, dtype=jnp.int32)
    t_idx = jnp.arange(T)[None, :]
    word = jnp.where(t_idx < sentence_length[:, None], word, padding_id)

    accu_x, accu_rep = bilstm_forward(word, sentence_length, params)
    jax.block_until_ready((accu_x, accu_rep))
    print("KERNEL_OK")
</pallas_src>

<mosaic_0001>
module attributes {stable_mosaic.version = 11 : i64} {
  func.func @bilstm_pool_kernel(%arg0: i32, %arg1: memref<16xi32, #tpu.memory_space<smem>>, %arg2: memref<8x8x16xf32, #tpu.memory_space<vmem>>, %arg3: memref<16x256xbf16, #tpu.memory_space<vmem>>, %arg4: memref<1x256xf32, #tpu.memory_space<vmem>>, %arg5: memref<32x128xbf16, #tpu.memory_space<vmem>>, %arg6: memref<32x128xbf16, #tpu.memory_space<vmem>>, %arg7: memref<64x2xf32, #tpu.memory_space<vmem>>, %arg8: memref<1x2xf32, #tpu.memory_space<vmem>>, %arg9: memref<8x2xf32, #tpu.memory_space<vmem>>, %arg10: memref<8x8x128xf32, #tpu.memory_space<vmem>>, %arg11: memref<8x8x128xf32, #tpu.memory_space<vmem>>) attributes {dimension_semantics = [#tpu.dimension_semantics<parallel>], iteration_bounds = array<i64: 2>, scalar_prefetch = 1 : i64, scratch_operands = 2 : i64, tpu.core_type = #tpu.core_type<tc>, window_params = [{transform_indices = @transform_0, window_bounds = array<i64: 8, 8, 16>}, {pipeline_mode = #tpu.pipeline_mode<synchronous>, transform_indices = @transform_1, window_bounds = array<i64: 16, 256>}, {pipeline_mode = #tpu.pipeline_mode<synchronous>, transform_indices = @transform_2, window_bounds = array<i64: 1, 256>}, {pipeline_mode = #tpu.pipeline_mode<synchronous>, transform_indices = @transform_3, window_bounds = array<i64: 32, 128>}, {pipeline_mode = #tpu.pipeline_mode<synchronous>, transform_indices = @transform_4, window_bounds = array<i64: 32, 128>}, {pipeline_mode = #tpu.pipeline_mode<synchronous>, transform_indices = @transform_5, window_bounds = array<i64: 64, 2>}, {pipeline_mode = #tpu.pipeline_mode<synchronous>, transform_indices = @transform_6, window_bounds = array<i64: 1, 2>}, {transform_indices = @transform_7, window_bounds = array<i64: 8, 2>}]} {
    %c8_i32 = arith.constant 8 : i32
    %0 = arith.muli %arg0, %c8_i32 : i32
    %1 = arith.index_cast %0 : i32 to index
    %2 = memref.load %arg1[%1] : memref<16xi32, #tpu.memory_space<smem>>
    %c1_i32 = arith.constant 1 : i32
    %3 = arith.addi %0, %c1_i32 : i32
    %4 = arith.index_cast %3 : i32 to index
    %5 = memref.load %arg1[%4] : memref<16xi32, #tpu.memory_space<smem>>
    %6 = arith.maxsi %2, %5 : i32
    %c2_i32 = arith.constant 2 : i32
    %7 = arith.addi %0, %c2_i32 : i32
    %8 = arith.index_cast %7 : i32 to index
    %9 = memref.load %arg1[%8] : memref<16xi32, #tpu.memory_space<smem>>
    %10 = arith.maxsi %6, %9 : i32
    %c3_i32 = arith.constant 3 : i32
    %11 = arith.addi %0, %c3_i32 : i32
    %12 = arith.index_cast %11 : i32 to index
    %13 = memref.load %arg1[%12] : memref<16xi32, #tpu.memory_space<smem>>
    %14 = arith.maxsi %10, %13 : i32
    %c4_i32 = arith.constant 4 : i32
    %15 = arith.addi %0, %c4_i32 : i32
    %16 = arith.index_cast %15 : i32 to index
    %17 = memref.load %arg1[%16] : memref<16xi32, #tpu.memory_space<smem>>
    %18 = arith.maxsi %14, %17 : i32
    %c5_i32 = arith.constant 5 : i32
    %19 = arith.addi %0, %c5_i32 : i32
    %20 = arith.index_cast %19 : i32 to index
    %21 = memref.load %arg1[%20] : memref<16xi32, #tpu.memory_space<smem>>
    %22 = arith.maxsi %18, %21 : i32
    %c6_i32 = arith.constant 6 : i32
    %23 = arith.addi %0, %c6_i32 : i32
    %24 = arith.index_cast %23 : i32 to index
    %25 = memref.load %arg1[%24] : memref<16xi32, #tpu.memory_space<smem>>
    %26 = arith.maxsi %22, %25 : i32
    %c7_i32 = arith.constant 7 : i32
    %27 = arith.addi %0, %c7_i32 : i32
    %28 = arith.index_cast %27 : i32 to index
    %29 = memref.load %arg1[%28] : memref<16xi32, #tpu.memory_space<smem>>
    %30 = arith.maxsi %26, %29 : i32
    %31 = tpu.iota {dimensions = array<i32: 0>} : vector<8x1xi32>
    %c0_i32 = arith.constant 0 : i32
    %32 = vector.broadcast %c0_i32 : i32 to vector<8x1xi32>
    %c0_i32_0 = arith.constant 0 : i32
    %33 = vector.broadcast %c0_i32_0 : i32 to vector<8x1xi32>
    %34 = arith.cmpi eq, %31, %33 : vector<8x1xi32>
    %c0_i32_1 = arith.constant 0 : i32
    %35 = arith.addi %0, %c0_i32_1 : i32
    %36 = arith.index_cast %35 : i32 to index
    %37 = memref.load %arg1[%36] : memref<16xi32, #tpu.memory_space<smem>>
    %38 = vector.broadcast %37 : i32 to vector<8x1xi32>
    %39 = arith.select %34, %38, %32 : vector<8x1xi1>, vector<8x1xi32>
    %c1_i32_2 = arith.constant 1 : i32
    %40 = vector.broadcast %c1_i32_2 : i32 to vector<8x1xi32>
    %41 = arith.cmpi eq, %31, %40 : vector<8x1xi32>
    %c1_i32_3 = arith.constant 1 : i32
    %42 = arith.addi %0, %c1_i32_3 : i32
    %43 = arith.index_cast %42 : i32 to index
    %44 = memref.load %arg1[%43] : memref<16xi32, #tpu.memory_space<smem>>
    %45 = vector.broadcast %44 : i32 to vector<8x1xi32>
    %46 = arith.select %41, %45, %39 : vector<8x1xi1>, vector<8x1xi32>
    %c2_i32_4 = arith.constant 2 : i32
    %47 = vector.broadcast %c2_i32_4 : i32 to vector<8x1xi32>
    %48 = arith.cmpi eq, %31, %47 : vector<8x1xi32>
    %c2_i32_5 = arith.constant 2 : i32
    %49 = arith.addi %0, %c2_i32_5 : i32
    %50 = arith.index_cast %49 : i32 to index
    %51 = memref.load %arg1[%50] : memref<16xi32, #tpu.memory_space<smem>>
    %52 = vector.broadcast %51 : i32 to vector<8x1xi32>
    %53 = arith.select %48, %52, %46 : vector<8x1xi1>, vector<8x1xi32>
    %c3_i32_6 = arith.constant 3 : i32
    %54 = vector.broadcast %c3_i32_6 : i32 to vector<8x1xi32>
    %55 = arith.cmpi eq, %31, %54 : vector<8x1xi32>
    %c3_i32_7 = arith.constant 3 : i32
    %56 = arith.addi %0, %c3_i32_7 : i32
    %57 = arith.index_cast %56 : i32 to index
    %58 = memref.load %arg1[%57] : memref<16xi32, #tpu.memory_space<smem>>
    %59 = vector.broadcast %58 : i32 to vector<8x1xi32>
    %60 = arith.select %55, %59, %53 : vector<8x1xi1>, vector<8x1xi32>
    %c4_i32_8 = arith.constant 4 : i32
    %61 = vector.broadcast %c4_i32_8 : i32 to vector<8x1xi32>
    %62 = arith.cmpi eq, %31, %61 : vector<8x1xi32>
    %c4_i32_9 = arith.constant 4 : i32
    %63 = arith.addi %0, %c4_i32_9 : i32
    %64 = arith.index_cast %63 : i32 to index
    %65 = memref.load %arg1[%64] : memref<16xi32, #tpu.memory_space<smem>>
    %66 = vector.broadcast %65 : i32 to vector<8x1xi32>
    %67 = arith.select %62, %66, %60 : vector<8x1xi1>, vector<8x1xi32>
    %c5_i32_10 = arith.constant 5 : i32
    %68 = vector.broadcast %c5_i32_10 : i32 to vector<8x1xi32>
    %69 = arith.cmpi eq, %31, %68 : vector<8x1xi32>
    %c5_i32_11 = arith.constant 5 : i32
    %70 = arith.addi %0, %c5_i32_11 : i32
    %71 = arith.index_cast %70 : i32 to index
    %72 = memref.load %arg1[%71] : memref<16xi32, #tpu.memory_space<smem>>
    %73 = vector.broadcast %72 : i32 to vector<8x1xi32>
    %74 = arith.select %69, %73, %67 : vector<8x1xi1>, vector<8x1xi32>
    %c6_i32_12 = arith.constant 6 : i32
    %75 = vector.broadcast %c6_i32_12 : i32 to vector<8x1xi32>
    %76 = arith.cmpi eq, %31, %75 : vector<8x1xi32>
    %c6_i32_13 = arith.constant 6 : i32
    %77 = arith.addi %0, %c6_i32_13 : i32
    %78 = arith.index_cast %77 : i32 to index
    %79 = memref.load %arg1[%78] : memref<16xi32, #tpu.memory_space<smem>>
    %80 = vector.broadcast %79 : i32 to vector<8x1xi32>
    %81 = arith.select %76, %80, %74 : vector<8x1xi1>, vector<8x1xi32>
    %c7_i32_14 = arith.constant 7 : i32
    %82 = vector.broadcast %c7_i32_14 : i32 to vector<8x1xi32>
    %83 = arith.cmpi eq, %31, %82 : vector<8x1xi32>
    %c7_i32_15 = arith.constant 7 : i32
    %84 = arith.addi %0, %c7_i32_15 : i32
    %85 = arith.index_cast %84 : i32 to index
    %86 = memref.load %arg1[%85] : memref<16xi32, #tpu.memory_space<smem>>
    %87 = vector.broadcast %86 : i32 to vector<8x1xi32>
    %88 = arith.select %83, %87, %81 : vector<8x1xi1>, vector<8x1xi32>
    %c0 = arith.constant 0 : index
    %c0_16 = arith.constant 0 : index
    %89 = vector.load %arg5[%c0, %c0_16] : memref<32x128xbf16, #tpu.memory_space<vmem>>, vector<32x128xbf16>
    %c0_17 = arith.constant 0 : index
    %c0_18 = arith.constant 0 : index
    %90 = vector.load %arg6[%c0_17, %c0_18] : memref<32x128xbf16, #tpu.memory_space<vmem>>, vector<32x128xbf16>
    %c0_19 = arith.constant 0 : index
    %c0_20 = arith.constant 0 : index
    %c0_21 = arith.constant 0 : index
    %91 = vector.load %arg2[%c0_19, %c0_20, %c0_21] : memref<8x8x16xf32, #tpu.memory_space<vmem>>, vector<8x8x16xf32>
    %92 = arith.truncf %91 : vector<8x8x16xf32> to vector<8x8x16xbf16>
    %93 = vector.shape_cast %92 : vector<8x8x16xbf16> to vector<64x16xbf16>
    %c0_22 = arith.constant 0 : index
    %c0_23 = arith.constant 0 : index
    %94 = vector.load %arg3[%c0_22, %c0_23] : memref<16x256xbf16, #tpu.memory_space<vmem>>, vector<16x256xbf16>
    %cst = arith.constant dense<0.000000e+00> : vector<64x256xf32>
    %95 = tpu.matmul %93, %94, %cst {dimension_numbers = #tpu.dot_dimension_numbers<[1], [0], [0], [1], [0, 0, 1, 1], [], []>} : vector<64x16xbf16>, vector<16x256xbf16>, vector<64x256xf32> -> vector<64x256xf32>
    %c0_24 = arith.constant 0 : index
    %c0_25 = arith.constant 0 : index
    %96 = vector.load %arg4[%c0_24, %c0_25] : memref<1x256xf32, #tpu.memory_space<vmem>>, vector<1x256xf32>
    %97 = vector.broadcast %96 : vector<1x256xf32> to vector<64x256xf32>
    %98 = arith.addf %95, %97 : vector<64x256xf32>
    %99 = vector.shape_cast %98 : vector<64x256xf32> to vector<8x8x256xf32>
    %100 = vector.extract_strided_slice %99 {offsets = [0, 0, 0], sizes = [8, 8, 128], strides = [1, 1, 1]} : vector<8x8x256xf32> to vector<8x8x128xf32>
    %c0_26 = arith.constant 0 : index
    %c0_27 = arith.constant 0 : index
    %c0_28 = arith.constant 0 : index
    %101 = vector.load %arg10[%c0_26, %c0_27, %c0_28] : memref<8x8x128xf32, #tpu.memory_space<vmem>>, vector<8x8x128xf32>
    tpu.vector_store %arg10[%c0_26, %c0_27, %c0_28], %100 {strides = array<i32>} : memref<8x8x128xf32, #tpu.memory_space<vmem>>, vector<8x8x128xf32>,
    %102 = vector.extract_strided_slice %99 {offsets = [0, 0, 128], sizes = [8, 8, 128], strides = [1, 1, 1]} : vector<8x8x256xf32> to vector<8x8x128xf32>
    %c0_29 = arith.constant 0 : index
    %c0_30 = arith.constant 0 : index
    %c0_31 = arith.constant 0 : index
    %103 = vector.load %arg11[%c0_29, %c0_30, %c0_31] : memref<8x8x128xf32, #tpu.memory_space<vmem>>, vector<8x8x128xf32>
    tpu.vector_store %arg11[%c0_29, %c0_30, %c0_31], %102 {strides = array<i32>} : memref<8x8x128xf32, #tpu.memory_space<vmem>>, vector<8x8x128xf32>,
    %cst_32 = arith.constant 0.000000e+00 : f32
    %104 = vector.broadcast %cst_32 : f32 to vector<8x32xf32>
    %cst_33 = arith.constant 0xFF800000 : f32
    %105 = vector.broadcast %cst_33 : f32 to vector<8x32xf32>
    %c1_i32_34 = arith.constant 1 : i32
    %106 = arith.subi %30, %c1_i32_34 : i32
    %c0_i32_35 = arith.constant 0 : i32
    %107 = arith.subi %30, %c0_i32_35 : i32
    %108 = arith.addi %c0_i32_35, %107 : i32
    %c1_i32_36 = arith.constant 1 : i32
    %109:6 = scf.for %arg12 = %c0_i32_35 to %108 step %c1_i32_36 iter_args(%arg13 = %104, %arg14 = %104, %arg15 = %104, %arg16 = %104, %arg17 = %105, %arg18 = %105) -> (vector<8x32xf32>, vector<8x32xf32>, vector<8x32xf32>, vector<8x32xf32>, vector<8x32xf32>, vector<8x32xf32>)  : i32 {
      %130 = arith.index_cast %arg12 : i32 to index
      %c0_47 = arith.constant 0 : index
      %c0_48 = arith.constant 0 : index
      %131 = vector.load %arg10[%130, %c0_47, %c0_48] : memref<8x8x128xf32, #tpu.memory_space<vmem>>, vector<1x8x128xf32>
      %132 = vector.shape_cast %131 : vector<1x8x128xf32> to vector<8x128xf32>
      %133 = arith.truncf %arg13 : vector<8x32xf32> to vector<8x32xbf16>
      %cst_49 = arith.constant dense<0.000000e+00> : vector<8x128xf32>
      %134 = tpu.matmul %133, %89, %cst_49 {dimension_numbers = #tpu.dot_dimension_numbers<[1], [0], [0], [1], [0, 0, 1, 1], [], []>} : vector<8x32xbf16>, vector<32x128xbf16>, vector<8x128xf32> -> vector<8x128xf32>
      %135 = arith.addf %132, %134 : vector<8x128xf32>
      %136 = vector.extract_strided_slice %135 {offsets = [0, 0], sizes = [8, 96], strides = [1, 1]} : vector<8x128xf32> to vector<8x96xf32>
      %137 = arith.negf %136 : vector<8x96xf32>
      %138 = math.exp %137 : vector<8x96xf32>
      %cst_50 = arith.constant 1.000000e+00 : f32
      %139 = vector.broadcast %cst_50 : f32 to vector<8x96xf32>
      %140 = arith.addf %139, %138 : vector<8x96xf32>
      %141 = arith.divf %139, %140 : vector<8x96xf32>
      %142 = vector.extract_strided_slice %135 {offsets = [0, 96], sizes = [8, 32], strides = [1, 1]} : vector<8x128xf32> to vector<8x32xf32>
      %143 = math.tanh %142 : vector<8x32xf32>
      %144 = vector.extract_strided_slice %141 {offsets = [0, 0], sizes = [8, 32], strides = [1, 1]} : vector<8x96xf32> to vector<8x32xf32>
      %145 = vector.extract_strided_slice %141 {offsets = [0, 32], sizes = [8, 32], strides = [1, 1]} : vector<8x96xf32> to vector<8x32xf32>
      %146 = vector.extract_strided_slice %141 {offsets = [0, 64], sizes = [8, 32], strides = [1, 1]} : vector<8x96xf32> to vector<8x32xf32>
      %147 = arith.mulf %145, %arg14 : vector<8x32xf32>
      %148 = arith.mulf %144, %143 : vector<8x32xf32>
      %149 = arith.addf %147, %148 : vector<8x32xf32>
      %150 = math.tanh %149 : vector<8x32xf32>
      %151 = arith.mulf %146, %150 : vector<8x32xf32>
      %152 = vector.broadcast %arg12 : i32 to vector<8x1xi32>
      %153 = arith.cmpi slt, %152, %88 : vector<8x1xi32>
      %154 = vector.shape_cast %153 : vector<8x1xi1> to vector<8x1xi1>
      %155 = vector.broadcast %154 : vector<8x1xi1> to vector<8x32xi1>
      %156 = arith.select %155, %151, %arg13 : vector<8x32xi1>, vector<8x32xf32>
      %157 = vector.shape_cast %153 : vector<8x1xi1> to vector<8x1xi1>
      %158 = vector.broadcast %157 : vector<8x1xi1> to vector<8x32xi1>
      %159 = arith.select %158, %149, %arg14 : vector<8x32xi1>, vector<8x32xf32>
      %cst_51 = arith.constant 0.000000e+00 : f32
      %160 = vector.shape_cast %153 : vector<8x1xi1> to vector<8x1xi1>
      %161 = vector.broadcast %160 : vector<8x1xi1> to vector<8x32xi1>
      %162 = vector.broadcast %cst_51 : f32 to vector<8x32xf32>
      %163 = arith.select %161, %151, %162 : vector<8x32xi1>, vector<8x32xf32>
      %164 = arith.maximumf %arg17, %163 : vector<8x32xf32>
      %165 = arith.subi %106, %arg12 : i32
      %166 = arith.index_cast %165 : i32 to index
      %c0_52 = arith.constant 0 : index
      %c0_53 = arith.constant 0 : index
      %167 = vector.load %arg11[%166, %c0_52, %c0_53] : memref<8x8x128xf32, #tpu.memory_space<vmem>>, vector<1x8x128xf32>
      %168 = vector.shape_cast %167 : vector<1x8x128xf32> to vector<8x128xf32>
      %169 = arith.truncf %arg15 : vector<8x32xf32> to vector<8x32xbf16>
      %cst_54 = arith.constant dense<0.000000e+00> : vector<8x128xf32>
      %170 = tpu.matmul %169, %90, %cst_54 {dimension_numbers = #tpu.dot_dimension_numbers<[1], [0], [0], [1], [0, 0, 1, 1], [], []>} : vector<8x32xbf16>, vector<32x128xbf16>, vector<8x128xf32> -> vector<8x128xf32>
      %171 = arith.addf %168, %170 : vector<8x128xf32>
      %172 = vector.extract_strided_slice %171 {offsets = [0, 0], sizes = [8, 96], strides = [1, 1]} : vector<8x128xf32> to vector<8x96xf32>
      %173 = arith.negf %172 : vector<8x96xf32>
      %174 = math.exp %173 : vector<8x96xf32>
      %cst_55 = arith.constant 1.000000e+00 : f32
      %175 = vector.broadcast %cst_55 : f32 to vector<8x96xf32>
      %176 = arith.addf %175, %174 : vector<8x96xf32>
      %177 = arith.divf %175, %176 : vector<8x96xf32>
      %178 = vector.extract_strided_slice %171 {offsets = [0, 96], sizes = [8, 32], strides = [1, 1]} : vector<8x128xf32> to vector<8x32xf32>
      %179 = math.tanh %178 : vector<8x32xf32>
      %180 = vector.extract_strided_slice %177 {offsets = [0, 0], sizes = [8, 32], strides = [1, 1]} : vector<8x96xf32> to vector<8x32xf32>
      %181 = vector.extract_strided_slice %177 {offsets = [0, 32], sizes = [8, 32], strides = [1, 1]} : vector<8x96xf32> to vector<8x32xf32>
      %182 = vector.extract_strided_slice %177 {offsets = [0, 64], sizes = [8, 32], strides = [1, 1]} : vector<8x96xf32> to vector<8x32xf32>
      %183 = arith.mulf %181, %arg16 : vector<8x32xf32>
      %184 = arith.mulf %180, %179 : vector<8x32xf32>
      %185 = arith.addf %183, %184 : vector<8x32xf32>
      %186 = math.tanh %185 : vector<8x32xf32>
      %187 = arith.mulf %182, %186 : vector<8x32xf32>
      %188 = vector.broadcast %165 : i32 to vector<8x1xi32>
      %189 = arith.cmpi slt, %188, %88 : vector<8x1xi32>
      %190 = vector.shape_cast %189 : vector<8x1xi1> to vector<8x1xi1>
      %191 = vector.broadcast %190 : vector<8x1xi1> to vector<8x32xi1>
      %192 = arith.select %191, %187, %arg15 : vector<8x32xi1>, vector<8x32xf32>
      %193 = vector.shape_cast %189 : vector<8x1xi1> to vector<8x1xi1>
      %194 = vector.broadcast %193 : vector<8x1xi1> to vector<8x32xi1>
      %195 = arith.select %194, %185, %arg16 : vector<8x32xi1>, vector<8x32xf32>
      %cst_56 = arith.constant 0.000000e+00 : f32
      %196 = vector.shape_cast %189 : vector<8x1xi1> to vector<8x1xi1>
      %197 = vector.broadcast %196 : vector<8x1xi1> to vector<8x32xi1>
      %198 = vector.broadcast %cst_56 : f32 to vector<8x32xf32>
      %199 = arith.select %197, %187, %198 : vector<8x32xi1>, vector<8x32xf32>
      %200 = arith.maximumf %arg18, %199 : vector<8x32xf32>
      scf.yield %156, %159, %192, %195, %164, %200 : vector<8x32xf32>, vector<8x32xf32>, vector<8x32xf32>, vector<8x32xf32>, vector<8x32xf32>, vector<8x32xf32>
    }
    %c8_i32_37 = arith.constant 8 : i32
    %110 = vector.broadcast %c8_i32_37 : i32 to vector<8x1xi32>
    %111 = arith.cmpi slt, %88, %110 : vector<8x1xi32>
    %cst_38 = arith.constant 0.000000e+00 : f32
    %112 = vector.broadcast %cst_38 : f32 to vector<8x32xf32>
    %113 = arith.maximumf %109#4, %112 : vector<8x32xf32>
    %114 = vector.shape_cast %111 : vector<8x1xi1> to vector<8x1xi1>
    %115 = vector.broadcast %114 : vector<8x1xi1> to vector<8x32xi1>
    %116 = arith.select %115, %113, %109#4 : vector<8x32xi1>, vector<8x32xf32>
    %cst_39 = arith.constant 0.000000e+00 : f32
    %117 = vector.broadcast %cst_39 : f32 to vector<8x32xf32>
    %118 = arith.maximumf %109#5, %117 : vector<8x32xf32>
    %119 = vector.shape_cast %111 : vector<8x1xi1> to vector<8x1xi1>
    %120 = vector.broadcast %119 : vector<8x1xi1> to vector<8x32xi1>
    %121 = arith.select %120, %118, %109#5 : vector<8x32xi1>, vector<8x32xf32>
    %122 = tpu.concatenate %116, %121 in 1 : vector<8x32xf32>, vector<8x32xf32> -> vector<8x64xf32>
    %c0_40 = arith.constant 0 : index
    %c0_41 = arith.constant 0 : index
    %123 = vector.load %arg7[%c0_40, %c0_41] : memref<64x2xf32, #tpu.memory_space<vmem>>, vector<64x2xf32>
    %cst_42 = arith.constant dense<0.000000e+00> : vector<8x2xf32>
    %124 = tpu.matmul %122, %123, %cst_42 {dimension_numbers = #tpu.dot_dimension_numbers<[1], [0], [0], [1], [0, 0, 1, 1], [], []>} : vector<8x64xf32>, vector<64x2xf32>, vector<8x2xf32> -> vector<8x2xf32>
    %c0_43 = arith.constant 0 : index
    %c0_44 = arith.constant 0 : index
    %125 = vector.load %arg8[%c0_43, %c0_44] : memref<1x2xf32, #tpu.memory_space<vmem>>, vector<1x2xf32>
    %126 = vector.broadcast %125 : vector<1x2xf32> to vector<8x2xf32>
    %127 = arith.addf %124, %126 : vector<8x2xf32>
    %128 = math.tanh %127 : vector<8x2xf32>
    %c0_45 = arith.constant 0 : index
    %c0_46 = arith.constant 0 : index
    %129 = vector.load %arg9[%c0_45, %c0_46] : memref<8x2xf32, #tpu.memory_space<vmem>>, vector<8x2xf32>
    tpu.vector_store %arg9[%c0_45, %c0_46], %128 {strides = array<i32>} : memref<8x2xf32, #tpu.memory_space<vmem>>, vector<8x2xf32>,
    return
  }
  func.func @transform_0(%arg0: i32, %arg1: memref<16xi32, #tpu.memory_space<smem>>) -> (i32, i32, i32) {
    %c0_i32 = arith.constant 0 : i32
    %c0_i32_0 = arith.constant 0 : i32
    %c0_i32_1 = arith.constant 0 : i32
    return %c0_i32, %arg0, %c0_i32_0 : i32, i32, i32
  }
  func.func @transform_1(%arg0: i32, %arg1: memref<16xi32, #tpu.memory_space<smem>>) -> (i32, i32) {
    %c0_i32 = arith.constant 0 : i32
    %c0_i32_0 = arith.constant 0 : i32
    %c0_i32_1 = arith.constant 0 : i32
    return %c0_i32, %c0_i32_0 : i32, i32
  }
  func.func @transform_2(%arg0: i32, %arg1: memref<16xi32, #tpu.memory_space<smem>>) -> (i32, i32) {
    %c0_i32 = arith.constant 0 : i32
    %c0_i32_0 = arith.constant 0 : i32
    %c0_i32_1 = arith.constant 0 : i32
    return %c0_i32, %c0_i32_0 : i32, i32
  }
  func.func @transform_3(%arg0: i32, %arg1: memref<16xi32, #tpu.memory_space<smem>>) -> (i32, i32) {
    %c0_i32 = arith.constant 0 : i32
    %c0_i32_0 = arith.constant 0 : i32
    %c0_i32_1 = arith.constant 0 : i32
    return %c0_i32, %c0_i32_0 : i32, i32
  }
  func.func @transform_4(%arg0: i32, %arg1: memref<16xi32, #tpu.memory_space<smem>>) -> (i32, i32) {
    %c0_i32 = arith.constant 0 : i32
    %c0_i32_0 = arith.constant 0 : i32
    %c0_i32_1 = arith.constant 0 : i32
    return %c0_i32, %c0_i32_0 : i32, i32
  }
  func.func @transform_5(%arg0: i32, %arg1: memref<16xi32, #tpu.memory_space<smem>>) -> (i32, i32) {
    %c0_i32 = arith.constant 0 : i32
    %c0_i32_0 = arith.constant 0 : i32
    %c0_i32_1 = arith.constant 0 : i32
    return %c0_i32, %c0_i32_0 : i32, i32
  }
  func.func @transform_6(%arg0: i32, %arg1: memref<16xi32, #tpu.memory_space<smem>>) -> (i32, i32) {
    %c0_i32 = arith.constant 0 : i32
    %c0_i32_0 = arith.constant 0 : i32
    %c0_i32_1 = arith.constant 0 : i32
    return %c0_i32, %c0_i32_0 : i32, i32
  }
  func.func @transform_7(%arg0: i32, %arg1: memref<16xi32, #tpu.memory_space<smem>>) -> (i32, i32) {
    %c0_i32 = arith.constant 0 : i32
    %c0_i32_0 = arith.constant 0 : i32
    return %arg0, %c0_i32 : i32, i32
  }
}

</mosaic_0001>

<bundles_post_ra>
// kernel: tpu_custom_call.1
= control target key start
LH: loop header
LB: loop body
LE: loop exit
PB: predicated region body
PF: predicated region fallthrough
CT: control target
= control target key end

     0   :  { %s1188_s30 = smov [#allocation5]   ;;  %s1632_s0 = inlined_call_operand.vmem [shape: s32[16], index: 0, kind: input, shape index: {}]   ;;  %s1633_s1 = inlined_call_operand.hbm [shape: f32[8,16,16], index: 1, kind: input, shape index: {}]   ;;  %s1634_s2 = inlined_call_operand.vmem [shape: bf16[16,256], index: 2, kind: input, shape index: {}]   ;;  %s1635_s3 = inlined_call_operand.vmem [shape: f32[1,256], index: 3, kind: input, shape index: {}]   ;;  %s1636_s4 = inlined_call_operand.vmem [shape: bf16[32,128], index: 4, kind: input, shape index: {}]   ;;  %s1637_s5 = inlined_call_operand.vmem [shape: bf16[32,128], index: 5, kind: input, shape index: {}]   ;;  %s1638_s6 = inlined_call_operand.vmem [shape: f32[64,2], index: 6, kind: input, shape index: {}]   ;;  %s1639_s7 = inlined_call_operand.vmem [shape: f32[1,2], index: 7, kind: input, shape index: {}]   ;;  %s1640_s8 = inlined_call_operand.vmem [shape: f32[16,2], index: 8, kind: output, shape index: {}]  }
   0x1   :  { %s14_s29 = sshll.u32 %s1632_s0, 4  ;;  %s15_s29 = int_to_ptr.vmem [resolvable:$true] %s14_s29 }
   0x2   :  { %17 = dma.vmem_to_smem %s15_s29, 16, %s1188_s30, [#allocation4] }
   0x3   :  { %1130 = dma.done.wait [#allocation4], 16 }
   0x4   :  { %1131 = vsyncadd [#allocation4], 4294967280 }
   0x5   :  { %20 = sfence }
   0x6   :  { %21 = vsyncpa [#allocation7], 0 }
   0x7   :  { %23 = vsyncpa [#allocation7 + $0x1], 0  ;;  %s1244_s9 = smov 0   ;;  %s1246_s10 = smov 0  }
   0x8   :  { %s1248_s11 = smov 0   ;;  %s1250_s12 = smov 0  }
   0x9 LB: > { %s1263_s0 = sadd.s32 4294967295, %s1150_s12   ;;  %s1266_s13 = sadd.s32 1, %s1150_s12   ;;  %s1150_s12 = sphi %s1250_s12, %s1655_s12   ;;  %s1146_s11 = sphi %s1248_s11, %s1654_s11   ;;  %s1142_s10 = sphi %s1246_s10, %s1653_s10   ;;  %s1138_s9 = sphi %s1244_s9, %s1652_s9  }
   0xa   : > { %s33_s14 = ssub.s32 %s1150_s12, %s1266_s13  ;;  %s36_s15 = sadd.s32 1, %s1146_s11 }
   0xb   : > { %p34_p0 = scmp.eq.s32.totalorder %s33_s14, 0  ;;  %p43_p1 = scmp.ne.s32.totalorder %s1146_s11, %s1142_s10 }
   0xc   : > { %p44_p2 = scmp.eq.s32.totalorder %s1150_s12, 0  ;;  %p49_p3 = scmp.ne.s32.totalorder %s1142_s10, %s1138_s9 }
   0xd   : > { %s1276_s16 = scalar_select %p34_p0, %s1146_s11, %s36_s15  }
   0xe   : > { %p1278_p4 = por %p44_p2, %p43_p1  ;;  %p50_p5 = scmp.eq.s32.totalorder %s1263_s0, 0 }
   0xf   : > { %p904_p6 = scmp.lt.s32.totalorder %s1150_s12, 2  ;;  %s243_s19 = sand.u32 1, %s1146_s11  }
  0x10   : > { %p1284_p7 = por %p50_p5, %p49_p3  ;;  %s841_s20 = sshll.u32 %s243_s19, 6 }
  0x11   : > { %s842_s21 = sshll.u32 %s1150_s12, 3  ;;  %s247_s25 = scalar_lea.vmem [#allocation6], %s841_s20 }
  0x12   : > { %s251_s24 = scalar_lea.hbm %s1633_s1, %s842_s21  ;;  %s254_s26 = sshll.u32 %s247_s25, 4  ;;  %s255_s26 = int_to_ptr.vmem [resolvable:$true] %s254_s26 }
  0x13   : > { %s252_s27 = sshll.u32 %s251_s24, 4  ;;  %p1295_p8 = pnand %p904_p6, %p1278_p4  ;;  %s253_s27 = int_to_ptr.hbm [resolvable:$true] %s252_s27 }
  0x14   : > { %s244_s29 = scalar_lea.sflag [#allocation7], %s243_s19  ;;  %s1048_s30 = sshra.s32 %s253_s27, 4  ;;  %s1049_s30 = int_to_ptr.hbm [resolvable:$true] %s1048_s30 }
  0x15   : > { %s1050_s9 = scalar_lea.hbm %s1049_s30, 64  ;;  %p1052_p10 = pneg %p1295_p8 }
  0x16   : > { %p1051_p9 = scmp.ne.s32.totalorder %s1049_s30, %s1050_s9  ;;  %s1055_s20 = scalar_lea.hbm %s1633_s1, 128 }
  0x17   : > { %p1056_p13 = scmp.lt.s32.totalorder %s1049_s30, %s1633_s1  ;;  %p1057_p0 = scmp.lt.s32.totalorder %s1055_s20, %s1050_s9 }
  0x18   : > { %p1053_p11 = pnand %p1052_p10, %p1051_p9 }
  0x19   : > { %p1058_p1 = por %p1057_p0, %p1056_p13 }
  0x1a   : > { %p1054_p12 = pneg %p1053_p11 }
  0x1c   : > { %p1059_p2 = pnand %p1058_p1, %p1054_p12 }
  0x1e   : > { %1062 = shalt.err (!%p1059_p2)
}
  0x1f   : > { %s1189_s19 = smov 256   ;;  %s1190_s22 = smov 128  }
  0x20   : > { %s1191_s23 = smov 8   ;;  %p843_p3 = scmp.ge.s32.totalorder %s1150_s12, 1 }
  0x21   : > { %903 = dma.hbm_to_vmem [thread:$0]  (!%p1295_p8), %s253_s27, 1024, %s255_s26, %s244_s29, %s1189_s19, %s1190_s22, %s1191_s23  }
  0x22   : > { %p262_p4 = scmp.lt.s32.totalorder %s1150_s12, 3 }
  0x24   : > { %p263_p5 = pnand %p843_p3, %p262_p4 }
  0x25   : > { %s268_s24 = sand.u32 (!%p263_p5), 1, %s1142_s10  }
  0x26   : > { %266 = sbr.rel (%p263_p5) target bundleno = 1084 (0x43c), region = 48  ;;  %s844_s25 = sshll.u32 (!%p263_p5), %s268_s24, 6 }
  0x27   : > { %s269_s30 = scalar_lea.sflag (!%p263_p5), [#allocation7], %s268_s24  ;;  %s1312_s9 = scalar_lea.vmem (!%p263_p5), [#allocation6], %s844_s25 }
  0x2b   : > { %1133 = dma.done.wait (%p1284_p7), %s269_s30, 1024  }
  0x2c   : > { %1135 = vsyncadd (%p1284_p7), %s269_s30, 4294966272  ;;  %s846_s28 = sshll.u32 %s1263_s0, 3  ;;  %p303_p6 = scmp.lt.s32.totalorder %s1263_s0, 1  ;;  %v338_v0 = vlaneseq  ;;  %v372_v3 = vld [vmem:[%s1312_s9] sm:$0xff]  ;;  %v373_v7 = vld [vmem:[%s1312_s9 + $0x8] sm:$0xff]  ;;  %vm426_vm8 = vcmask 130048  }
  0x2d   : > { %s1320_s26 = sld [smem:[#allocation5 + %s846_s28]]  ;;  %s310_s12 = sadd.s32 1, %s846_s28  ;;  %v1354_v6 = vld [vmem:[%s1636_s4] sm:$0xf]  ;;  %v380_v8 = vpack.c.bf16 %v372_v3, %v372_v3  ;;  %v1363_v11 = vld [vmem:[%s1636_s4] sm:$0xf0]  ;;  %v381_v14 = vpack.c.bf16 %v373_v7, %v373_v7 }
  0x2e   : > { %s1322_s27 = sld [smem:[#allocation5 + %s310_s12]]  ;;  %s314_s29 = sadd.s32 2, %s846_s28  ;;  %v1328_v1 = vshrl.u32 %v338_v0, 7  ;;  %v1368_v12 = vld [vmem:[%s1636_s4 + $0x8] sm:$0xf]  ;;  %v376_v26 = vld [vmem:[%s1312_s9 + $0x20] sm:$0xff] }
  0x2f   : > { %s1324_s14 = sld [smem:[#allocation5 + %s314_s29]]  ;;  %s318_s15 = sadd.s32 3, %s846_s28  ;;  %v1373_v13 = vld [vmem:[%s1636_s4 + $0x8] sm:$0xf0]  ;;  %v1386_v17 = vld [vmem:[%s1637_s5] sm:$0xf]  ;;  %v404_v20 = vunpack.c.l.b16 %v380_v8  ;;  %v405_v25 = vunpack.c.l.b16 %v381_v14  ;;  %v384_v32 = vpack.c.bf16 %v376_v26, %v376_v26 }
  0x30   : > { %s1326_s20 = sld [smem:[#allocation5 + %s318_s15]]  ;;  %s322_s21 = sadd.s32 4, %s846_s28  ;;  %vm340_vm0 = vcmp.eq.s32.totalorder %v1328_v1, 0  ;;  %vm343_vm1 = vcmp.eq.s32.totalorder %v1328_v1, 1  ;;  %vm346_vm2 = vcmp.eq.s32.totalorder %v1328_v1, 2  ;;  %vm349_vm3 = vcmp.eq.s32.totalorder %v1328_v1, 3 }
  0x31   : > { %s1330_s18 = sld [smem:[#allocation5 + %s322_s21]]  ;;  %s326_s17 = sadd.s32 5, %s846_s28  ;;  %vm352_vm4 = vcmp.eq.s32.totalorder %v1328_v1, 4  ;;  %vm355_vm5 = vcmp.eq.s32.totalorder %v1328_v1, 5  ;;  %vm358_vm6 = vcmp.eq.s32.totalorder %v1328_v1, 6  ;;  %vm361_vm7 = vcmp.eq.s32.totalorder %v1328_v1, 7 }
  0x32   : > { %s1332_s19 = sld [smem:[#allocation5 + %s326_s17]]  ;;  %s330_s22 = sadd.s32 6, %s846_s28  ;;  %v1391_v18 = vld [vmem:[%s1637_s5] sm:$0xf0]  ;;  %v1396_v19 = vld [vmem:[%s1637_s5 + $0x8] sm:$0xf]  ;;  %v412_v40 = vpack.c.b16 %v405_v25, %v404_v20  ;;  %v408_v43 = vunpack.c.l.b16 %v384_v32 }
  0x33   : > { %s1338_s23 = sld [smem:[#allocation5 + %s330_s22]]  ;;  %s334_s24 = sadd.s32 7, %s846_s28  ;;  %v341_v2 = vstv %s1320_s26  ;;  %v1404_v23 = vld [vmem:[%s1637_s5 + $0x8] sm:$0xf0]  ;;  %v849_v24 = vld [vmem:[%s1634_s2] sm:$0xf] }
  0x34   : > { %p312_p7 = scmp.gt.s32.totalorder %s1320_s26, %s1322_s27  ;;  %s1347_s25 = sld [smem:[#allocation5 + %s334_s24]]  ;;  %v342_v4 = vsel %vm340_vm0, %v341_v2, 0  ;;  %v344_v5 = vstv %s1322_s27  ;;  %v895_v29 = vld [vmem:[%s1634_s2 + $0x4] sm:$0xf0]  ;;  %v894_v30 = vld [vmem:[%s1634_s2 + $0x4] sm:$0xf] }
  0x35   : > { %v345_v9 = vsel %vm343_vm1, %v344_v5, %v342_v4  ;;  %v347_v10 = vstv %s1324_s14  ;;  %s1659_s0 = smov (!%p303_p6, %s1263_s0), 1  ;;  %v851_v31 = vld [vmem:[%s1634_s2 + $0x8] sm:$0xf0]  ;;  %v850_v35 = vor.u32 %v895_v29, %v849_v24  ;;  %v374_v46 = vld [vmem:[%s1312_s9 + $0x10] sm:$0xff]  ;;  %v375_v47 = vld [vmem:[%s1312_s9 + $0x18] sm:$0xff] }
  0x36   : > { %s1657_s26 = smov (!%p312_p7, %s1320_s26), %s1322_s27  ;;  %v348_v15 = vsel %vm346_vm2, %v347_v10, %v345_v9  ;;  %v350_v16 = vstv %s1326_s20  ;;  %s845_s27 = sshll.u32 %s1659_s0, 3  ;;  %v854_v36 = vor.u32 %v894_v30, %v851_v31  ;;  %v377_v37 = vld [vmem:[%s1312_s9 + $0x28] sm:$0xff]  ;;  %v378_v48 = vld [vmem:[%s1312_s9 + $0x30] sm:$0xff]  ;;  %v379_v49 = vld [vmem:[%s1312_s9 + $0x38] sm:$0xff]  ;;  %v382_v50 = vpack.c.bf16 %v374_v46, %v374_v46 }
  0x37   : > { %v351_v21 = vsel %vm349_vm3, %v350_v16, %v348_v15  ;;  %v353_v22 = vstv %s1330_s18  ;;  %p316_p8 = scmp.gt.s32.totalorder %s1657_s26, %s1324_s14  ;;  %v385_v41 = vpack.c.bf16 %v377_v37, %v377_v37  ;;  %s1441_s0 = scalar_lea.vmem %s1640_s8, %s845_s27  ;;  %446 = vmatpush.bf16.msra.mxu0 %v850_v35  ;;  %896 = vmatpush.bf16.msra.mxu2 %v850_v35  ;;  %v383_v51 = vpack.c.bf16 %v375_v47, %v375_v47  ;;  %v390_v60 = vld [vmem:[%s1635_s3] sm:$0x3] }
  0x38   : > { %v354_v27 = vsel %vm352_vm4, %v353_v22, %v351_v21  ;;  %v356_v28 = vstv %s1332_s19  ;;  %475 = vmatpush.bf16.msra.mxu1 %v854_v36  ;;  %897 = vmatpush.bf16.msra.mxu3 %v854_v36  ;;  %v386_v52 = vpack.c.bf16 %v378_v48, %v378_v48  ;;  %v387_v53 = vpack.c.bf16 %v379_v49, %v379_v49 }
  0x39   : > { %v357_v33 = vsel %vm355_vm5, %v356_v28, %v354_v27  ;;  %v359_v34 = vstv %s1338_s23  ;;  %s1661_s26 = smov (!%p316_p8, %s1657_s26), %s1324_s14  ;;  %v409_v44 = vunpack.c.l.b16 %v385_v41  ;;  %v406_v54 = vunpack.c.l.b16 %v382_v50 }
  0x3a   : > { %v360_v38 = vsel %vm358_vm6, %v359_v34, %v357_v33  ;;  %v362_v39 = vstv %s1347_s25  ;;  %p320_p9 = scmp.gt.s32.totalorder %s1661_s26, %s1326_s20  ;;  %855 = vmatmul.msk.bf16.vlgmr.msra.gmra.mxu0 %vm426_vm8, %v412_v40  ;;  %v407_v55 = vunpack.c.l.b16 %v383_v51  ;;  %v410_v56 = vunpack.c.l.b16 %v386_v52 }
  0x3b   : > { %v1436_v42 = vsel %vm361_vm7, %v362_v39, %v360_v38  ;;  %v414_v45 = vpack.c.b16 %v409_v44, %v408_v43  ;;  %859 = vmatmul.msk.bf16.vlgmr.msra.gmra.mxu1 %vm426_vm8, %v412_v40  ;;  %v411_v57 = vunpack.c.l.b16 %v387_v53  ;;  %v392_v61 = vperm.slane %v390_v60, 0 }
  0x3c   : > { %s1663_s26 = smov (!%p320_p9, %s1661_s26), %s1326_s20  ;;  %v413_v58 = vpack.c.b16 %v407_v55, %v406_v54  ;;  %v393_v62 = vperm.slane %v390_v60, 1  ;;  %v1472_v39 = vmov -inf   ;;  %v1474_v40 = vmov -inf  }
  0x3d   : > { %p324_p10 = scmp.gt.s32.totalorder %s1663_s26, %s1330_s18  ;;  %857 = vmatmul.msk.bf16.vlgmr.msra.gmra.mxu2 %vm426_vm8, %v414_v45  ;;  %861 = vmatmul.msk.bf16.vlgmr.msra.gmra.mxu3 %vm426_vm8, %v414_v45  ;;  %v415_v59 = vpack.c.b16 %v411_v57, %v410_v56 }
  0x3f   : > { %s1665_s26 = smov (!%p324_p10, %s1663_s26), %s1330_s18 }
  0x40   : > { %p328_p11 = scmp.gt.s32.totalorder %s1665_s26, %s1332_s19 }
  0x42   : > { %s1667_s26 = smov (!%p328_p11, %s1665_s26), %s1332_s19 }
  0x43   : > { %p332_p12 = scmp.gt.s32.totalorder %s1667_s26, %s1338_s23 }
  0x45   : > { %s1669_s26 = smov (!%p332_p12, %s1667_s26), %s1338_s23 }
  0x46   : > { %p336_p13 = scmp.gt.s32.totalorder %s1669_s26, %s1347_s25 }
  0x48   : > { %s1671_s26 = smov (!%p336_p13, %s1669_s26), %s1347_s25 }
  0x49   : > { %s863_s9 = sadd.s32 4294967295, %s1671_s26  ;;  %p864_p0 = scmp.le.s32.totalorder %s1671_s26, 0 }
  0x4a   : > { %856 = vmatmul.msk.bf16.gmra.mxu0 %vm426_vm8, %v413_v58  ;;  %s1488_s18 = smov (!%p864_p0), 0  }
  0x4b   : > { %860 = vmatmul.msk.bf16.gmra.mxu1 %vm426_vm8, %v413_v58 }
  0x4d   : > { %858 = vmatmul.msk.bf16.gmra.mxu2 %vm426_vm8, %v415_v59  ;;  %862 = vmatmul.msk.bf16.gmra.mxu3 %vm426_vm8, %v415_v59 }
  0xb7   : > { %v448_v63 = vpop.f32.mrf.mxu0 }
  0xb8   : > { %v449_v0 = vadd.f32 %v448_v63, %v392_v61  ;;  %v477_v1 = vpop.f32.mrf.mxu1 }
  0xb9   : > { %v478_v2 = vadd.f32 %v477_v1, %v393_v62 }
  0xba   : > { %497 = vst [vmem:[#allocation2] sm:$0xff] %v449_v0 }
  0xbb   : > { %505 = vst [vmem:[#allocation3] sm:$0xff] %v478_v2 }
  0xbf   : > { %v450_v8 = vpop.f32.mrf.mxu0 }
  0xc0   : > { %v458_v3 = vpop.f32.mrf.mxu2  ;;  %v487_v4 = vpop.f32.mrf.mxu3  ;;  %v451_v10 = vadd.f32 %v450_v8, %v392_v61 }
  0xc1   : > { %v459_v5 = vadd.f32 %v458_v3, %v392_v61  ;;  %v488_v7 = vadd.f32 %v487_v4, %v393_v62  ;;  %v479_v9 = vpop.f32.mrf.mxu1 }
  0xc2   : > { %v480_v14 = vadd.f32 %v479_v9, %v393_v62  ;;  %498 = vst [vmem:[#allocation2 + $0x8] sm:$0xff] %v451_v10 }
  0xc3   : > { %501 = vst [vmem:[#allocation2 + $0x20] sm:$0xff] %v459_v5 }
  0xc4   : > { %509 = vst [vmem:[#allocation3 + $0x20] sm:$0xff] %v488_v7 }
  0xc5   : > { %506 = vst [vmem:[#allocation3 + $0x8] sm:$0xff] %v480_v14 }
  0xc7   : > { %v453_v22 = vpop.f32.mrf.mxu0 }
  0xc8   : > { %v460_v15 = vpop.f32.mrf.mxu2  ;;  %v489_v16 = vpop.f32.mrf.mxu3  ;;  %v454_v25 = vadd.f32 %v453_v22, %v392_v61 }
  0xc9   : > { %v461_v20 = vadd.f32 %v460_v15, %v392_v61  ;;  %v490_v21 = vadd.f32 %v489_v16, %v393_v62  ;;  %v482_v24 = vpop.f32.mrf.mxu1 }
  0xca   : > { %v483_v26 = vadd.f32 %v482_v24, %v393_v62  ;;  %499 = vst [vmem:[#allocation2 + $0x10] sm:$0xff] %v454_v25 }
  0xcb   : > { %502 = vst [vmem:[#allocation2 + $0x28] sm:$0xff] %v461_v20 }
  0xcc   : > { %510 = vst [vmem:[#allocation3 + $0x28] sm:$0xff] %v490_v21 }
  0xcd   : > { %507 = vst [vmem:[#allocation3 + $0x10] sm:$0xff] %v483_v26 }
  0xcf   : > { %v455_v31 = vpop.f32.mrf.mxu0 }
  0xd0   : > { %v463_v27 = vpop.f32.mrf.mxu2  ;;  %v492_v28 = vpop.f32.mrf.mxu3  ;;  %v456_v33 = vadd.f32 %v455_v31, %v392_v61 }
  0xd1   : > { %v464_v29 = vadd.f32 %v463_v27, %v392_v61  ;;  %v493_v30 = vadd.f32 %v492_v28, %v393_v62  ;;  %v484_v32 = vpop.f32.mrf.mxu1 }
  0xd2   : > { %v485_v34 = vadd.f32 %v484_v32, %v393_v62  ;;  %500 = vst [vmem:[#allocation2 + $0x18] sm:$0xff] %v456_v33 }
  0xd3   : > { %503 = vst [vmem:[#allocation2 + $0x30] sm:$0xff] %v464_v29 }
  0xd4   : > { %511 = vst [vmem:[#allocation3 + $0x30] sm:$0xff] %v493_v30 }
  0xd5   : > { %508 = vst [vmem:[#allocation3 + $0x18] sm:$0xff] %v485_v34 }
  0xd8   : > { %v465_v35 = vpop.f32.mrf.mxu2  ;;  %v494_v36 = vpop.f32.mrf.mxu3  ;;  %799 = sbr.rel (%p864_p0) target bundleno = 821 (0x335), region = 91 }
  0xd9   : > { %v466_v37 = vadd.f32 %v465_v35, %v392_v61  ;;  %v495_v38 = vadd.f32 %v494_v36, %v393_v62 }
  0xdb   : > { %504 = vst [vmem:[#allocation2 + $0x38] sm:$0xff] %v466_v37 }
  0xdc   : > { %512 = vst [vmem:[#allocation3 + $0x38] sm:$0xff] %v495_v38 }
  0xdd   : > { %v1476_v41 = vmov -inf   ;;  %v1478_v43 = vmov -inf   ;;  %v1480_v44 = vmov 0.0   ;;  %v1482_v45 = vmov 0.0  }
  0xde   : > { %v1484_v46 = vmov 0.0   ;;  %v1486_v47 = vmov 0.0  }
  0xdf LB: >> { %v873_v48 = vor.u32 %v1373_v13, %v1368_v12  ;;  %v529_v49 = vpack.c.bf16 %v1174_v47, %v1174_v47  ;;  %v869_v50 = vor.u32 %v1363_v11, %v1354_v6  ;;  %s1192_s19 = smov 64   ;;  %v612_v51 = vpack.c.bf16 %v1166_v45, %v1166_v45  ;;  %s865_s23 = sshll.u32 %s1178_s18, 3  ;;  %s1178_s18 = sphi %s1488_s18, %s517_s18   ;;  %v1174_v47 = vphi %v1486_v47, %v604_v47   ;;  %v1170_v46 = vphi %v1484_v46, %v605_v46   ;;  %v1166_v45 = vphi %v1482_v45, %v686_v45   ;;  %v1162_v44 = vphi %v1480_v44, %v687_v44   ;;  %v1158_v43 = vphi %v1478_v43, %v1649_v43   ;;  %v1154_v41 = vphi %v1476_v41, %v1648_v41  }
  0xe0   : >> { %v884_v52 = vor.u32 %v1404_v23, %v1396_v19  ;;  %v880_v53 = vor.u32 %v1391_v18, %v1386_v17  ;;  %vm545_vm9 = vcmask 261120   ;;  %s1527_s25 = ssub.s32 %s863_s9, %s1178_s18  ;;  %s527_s22 = scalar_lea.vmem [#allocation2], %s865_s23  ;;  %v600_v40 = vstv %s1178_s18 }
  0xe1   : >> { %555 = vmatpush.bf16.msra.mxu0 %v873_v48  ;;  %531 = vrot.lane.b32.xlu0 %v529_v49, %s1192_s19  ;;  %s876_s24 = sshll.u32 %s1527_s25, 3  ;;  %s1193_s28 = smov 32   ;;  %vm1537_vm2 = vcmp.lt.s32.totalorder %v600_v40, %v1436_v42 }
  0xe2   : >> { %637 = vmatpush.bf16.msra.mxu1 %v884_v52  ;;  %v528_v56 = vld [vmem:[%s527_s22] sm:$0xff]  ;;  %s610_s30 = scalar_lea.vmem [#allocation3], %s876_s24  ;;  %v682_v52 = vstv %s1527_s25  ;;  %s517_s18 = sadd.s32 1, %s1178_s18  }
  0xe3   : >> { %v611_v59 = vld [vmem:[%s610_s30] sm:$0xff]  ;;  %vm1547_vm3 = vcmp.lt.s32.totalorder %v682_v52, %v1436_v42  ;;  %p516_p1 = scmp.ge.s32.totalorder %s517_s18, %s1671_s26 }
  0xe5   : >> { %556 = vmatpush.bf16.msra.mxu0 %v869_v50 }
  0xe6   : >> { %638 = vmatpush.bf16.msra.mxu1 %v880_v53 }
  0xe9   : >> { %614 = vrot.lane.b32.xlu0 %v612_v51, %s1192_s19 }
 0x153   : >> { %v532_v54 = vpop.permute.xlu0 %531 }
 0x154   : >> { %874 = vmatmul.msk.bf16.vlgmr.msra.gmra.mxu0 %vm545_vm9, %v532_v54 }
 0x15b   : >> { %v615_v55 = vpop.permute.xlu0 %614 }
 0x15c   : >> { %885 = vmatmul.msk.bf16.vlgmr.msra.gmra.mxu1 %vm545_vm9, %v615_v55 }
 0x1d1   : >> { %v558_v57 = vpop.f32.mrf.mxu0 }
 0x1d2   : >> { %v562_v58 = vadd.f32 %v558_v57, %v528_v56 }
 0x1d4   : >> { %1017 = vtanh.f32 %v562_v58  ;;  %v875_v2 = vmul.f32 -1.442695, %v562_v58 }
 0x1d9   : >> { %v560_v60 = vpop.f32.mrf.mxu0  ;;  %v640_v61 = vpop.f32.mrf.mxu1 }
 0x1da   : >> { %v1018_v62 = vpop.eup %1017  ;;  %v644_v63 = vadd.f32 %v640_v61, %v611_v59 }
 0x1db   : >> { %585 = vrot.lane.b32.xlu1 %v1018_v62, %s1193_s28 }
 0x1dc   : >> { %1019 = vtanh.f32 %v644_v63  ;;  %v886_v3 = vmul.f32 -1.442695, %v644_v63 }
 0x1dd   : >> { %1021 = vpow2.f32 %v875_v2 }
 0x1de   : >> { %1023 = vpow2.f32 %v886_v3 }
 0x1e1   : >> { %v642_v0 = vpop.f32.mrf.mxu1 }
 0x1e2   : >> { %v1020_v1 = vpop.eup %1019 }
 0x1e3   : >> { %667 = vrot.lane.b32.xlu1 %v1020_v1, %s1193_s28  ;;  %v1022_v4 = vpop.eup %1021 }
 0x1e4   : >> { %v566_v5 = vadd.f32 1.0, %v1022_v4  ;;  %v1024_v7 = vpop.eup %1023 }
 0x1e5   : >> { %v648_v8 = vadd.f32 1.0, %v1024_v7 }
 0x1e6   : >> { %1025 = vrcp.f32 %v566_v5  ;;  %v578_v24 = vand.u32 2147483648, %v566_v5  ;;  %vm572_vm11 = vweird.f32 %v566_v5  ;;  %v576_v25 = vand.u32 2147483647, %v566_v5 }
 0x1e7   : >> { %1027 = vrcp.f32 %v648_v8  ;;  %v660_v33 = vand.u32 2147483648, %v648_v8  ;;  %vm654_vm15 = vweird.f32 %v648_v8  ;;  %v658_v34 = vand.u32 2147483647, %v648_v8 }
 0x1e8   : >> { %v579_v28 = vor.u32 1.1754944e-38, %v578_v24  ;;  %vm577_vm13 = vcmp.eq.f32.partialorder %v576_v25, 8.507059e+37 }
 0x1e9   : >> { %v661_v36 = vor.u32 1.1754944e-38, %v660_v33  ;;  %vm659_vm1 = vcmp.eq.f32.partialorder %v658_v34, 8.507059e+37 }
 0x1ec   : >> { %v1026_v9 = vpop.eup %1025 }
 0x1ed   : >> { %v568_v10 = vmul.f32 %v1026_v9, %v566_v5  ;;  %v1028_v15 = vpop.eup %1027  ;;  %vm573_vm10 = vweird.f32 %v1026_v9 }
 0x1ee   : >> { %v650_v20 = vmul.f32 %v1028_v15, %v648_v8  ;;  %vm574_vm12 = vmor %vm572_vm11, %vm573_vm10  ;;  %vm655_vm14 = vweird.f32 %v1028_v15 }
 0x1ef   : >> { %v569_v14 = vsub.f32 1.0, %v568_v10  ;;  %vm656_vm0 = vmor %vm654_vm15, %vm655_vm14 }
 0x1f0   : >> { %v651_v22 = vsub.f32 1.0, %v650_v20 }
 0x1f1   : >> { %v570_v16 = vmul.f32 %v1026_v9, %v569_v14 }
 0x1f2   : >> { %v652_v27 = vmul.f32 %v1028_v15, %v651_v22 }
 0x1f3   : >> { %v571_v21 = vadd.f32 %v1026_v9, %v570_v16 }
 0x1f4   : >> { %v653_v32 = vadd.f32 %v1028_v15, %v652_v27 }
 0x1f5   : >> { %v575_v26 = vsel %vm574_vm12, %v1026_v9, %v571_v21 }
 0x1f6   : >> { %v580_v30 = vsel %vm577_vm13, %v579_v28, %v575_v26  ;;  %v657_v35 = vsel %vm656_vm0, %v1028_v15, %v653_v32 }
 0x1f7   : >> { %v662_v38 = vsel %vm659_vm1, %v661_v36, %v657_v35  ;;  %v583_v48 = vmul.f32 %v1170_v46, %v580_v30 }
 0x1f8   : >> { %v665_v53 = vmul.f32 %v1162_v44, %v662_v38 }
 0x24d   : >> { %v586_v29 = vpop.permute.xlu1 %585 }
 0x24e   : >> { %v588_v31 = vmul.f32 %v586_v29, %v580_v30 }
 0x250   : >> { %590 = vrot.lane.b32.xlu2 %v588_v31, %s1193_s28 }
 0x255   : >> { %v668_v37 = vpop.permute.xlu1 %667 }
 0x256   : >> { %v670_v39 = vmul.f32 %v668_v37, %v662_v38 }
 0x258   : >> { %672 = vrot.lane.b32.xlu2 %v670_v39, %s1193_s28 }
 0x2aa   : >> { %v591_v49 = vpop.permute.xlu2 %590 }
 0x2ab   : >> { %v593_v51 = vadd.f32 %v591_v49, %v583_v48 }
 0x2ad   : >> { %1029 = vtanh.f32 %v593_v51  ;;  %v605_v46 = vsel %vm1537_vm2, %v593_v51, %v1170_v46  }
 0x2b2   : >> { %v673_v55 = vpop.permute.xlu2 %672 }
 0x2b3   : >> { %v1030_v56 = vpop.eup %1029  ;;  %v675_v57 = vadd.f32 %v673_v55, %v665_v53 }
 0x2b4   : >> { %596 = vrot.lane.b32.xlu0 %v1030_v56, %s1193_s28 }
 0x2b5   : >> { %1031 = vtanh.f32 %v675_v57  ;;  %v687_v44 = vsel %vm1547_vm3, %v675_v57, %v1162_v44  }
 0x2bb   : >> { %v1032_v58 = vpop.eup %1031 }
 0x2bc   : >> { %678 = vrot.lane.b32.xlu1 %v1032_v58, %s1193_s28 }
 0x326   : >> { %v597_v59 = vpop.permute.xlu0 %596 }
 0x327   : >> { %v599_v60 = vmul.f32 %v597_v59, %v580_v30 }
 0x329   : >> { %v604_v47 = vsel %vm1537_vm2, %v599_v60, %v1174_v47   ;;  %v606_v61 = vsel %vm1537_vm2, %v599_v60, 0.0 }
 0x32a   : >> { %v607_v62 = vmax.f32 %v1158_v43, %v606_v61  }
 0x32c   : >> { %v1649_v43 = vmov %v607_v62  ;;  %v1651_v40 = vmov (%p516_p1), %v607_v62 }
 0x32e   : >> { %v679_v63 = vpop.permute.xlu1 %678 }
 0x32f   : >> { %v681_v0 = vmul.f32 %v679_v63, %v662_v38 }
 0x330   : > { %519 = sbr.rel (!%p516_p1) target bundleno = 223 (0xdf), region = 97 }
 0x331   : >> { %v686_v45 = vsel %vm1547_vm3, %v681_v0, %v1166_v45   ;;  %v688_v1 = vsel %vm1547_vm3, %v681_v0, 0.0 }
 0x332   : >> { %v689_v2 = vmax.f32 %v1154_v41, %v688_v1  }
 0x334   : >> { %v1648_v41 = vmov %v689_v2  ;;  %v1650_v39 = vmov (%p516_p1), %v689_v2 }
 0x335 PF: > { %vm690_vm4 = vcmp.lt.s32.totalorder %v1436_v42, 8  ;;  %v691_v3 = vmax.f32 %v1186_v40, 0.0  ;;  %v714_v47 = vld [vmem:[%s1638_s6 + $0x38] sm:$0xff]  ;;  %v713_v6 = vld [vmem:[%s1638_s6 + $0x30] sm:$0xff]  ;;  %v712_v12 = vld [vmem:[%s1638_s6 + $0x28] sm:$0xff]  ;;  %s1194_s17 = smov 64   ;;  %v1186_v40 = vphi %v1474_v40, %v1651_v40   ;;  %v1182_v39 = vphi %v1472_v39, %v1650_v39  }
 0x336   : > { %731 = vmatpush.msra.mxu0 %v714_v47  ;;  %v695_v13 = vmax.f32 %v1182_v39, 0.0  ;;  %s1195_s9 = smov 96   ;;  %v711_v18 = vld [vmem:[%s1638_s6 + $0x20] sm:$0xff]  ;;  %v710_v19 = vld [vmem:[%s1638_s6 + $0x18] sm:$0xff]  ;;  %v709_v23 = vld [vmem:[%s1638_s6 + $0x10] sm:$0xff]  ;;  %vm705_vm5 = vcmask 261120  }
 0x337   : > { %v694_v11 = vsel %vm690_vm4, %v691_v3, %v1186_v40  ;;  %v708_v42 = vld [vmem:[%s1638_s6 + $0x8] sm:$0xff]  ;;  %v707_v41 = vld [vmem:[%s1638_s6] sm:$0xff]  ;;  %vm719_vm6 = vcmask 523264   ;;  %vm744_vm7 = vcmask 15360  }
 0x338   : > { %698 = vrot.lane.b32.xlu0 %v694_v11, %s1194_s17  ;;  %732 = vmatpush.msra.mxu0 %v713_v6  ;;  %v696_v17 = vsel %vm690_vm4, %v695_v13, %v1182_v39  ;;  %v1033_v46 = vld [vmem:[%s1639_s7] ss:$0 sm:$0xff] }
 0x33a   : > { %733 = vmatpush.msra.mxu0 %v712_v12 }
 0x33c   : > { %734 = vmatpush.msra.mxu0 %v711_v18 }
 0x33e   : > { %735 = vmatpush.msra.mxu0 %v710_v19 }
 0x340   : > { %702 = vrot.lane.b32.xlu0 %v696_v17, %s1195_s9  ;;  %736 = vmatpush.msra.mxu0 %v709_v23 }
 0x342   : > { %737 = vmatpush.msra.mxu0 %v708_v42 }
 0x344   : > { %738 = vmatpush.msra.mxu0 %v707_v41 }
 0x3aa   : > { %v699_v43 = vpop.permute.xlu0 %698 }
 0x3b2   : > { %v703_v44 = vpop.permute.xlu0 %702 }
 0x3b3   : > { %v706_v45 = vsel %vm705_vm5, %v699_v43, %v703_v44 }
 0x3b4   : > { %887 = vmatmul.msk.f32.vlgmr.msra.gmra.mxu0 %vm719_vm6, %v706_v45 }
 0x431   : > { %v740_v4 = vpop.f32.mrf.mxu0 }
 0x432   : > { %v741_v5 = vadd.f32 %v1033_v46, %v740_v4 }
 0x434   : > { %1034 = vtanh.f32 %v741_v5 }
 0x43a   : > { %v1035_v7 = vpop.eup %1034 }
 0x43b   : > { %745 = vst.msk [vmem:[%s1441_s0] sm:$0xff] %vm744_vm7, %v1035_v7 }
 0x43c PF: > { %p26_p2 = scmp.ge.s32.totalorder %s1266_s13, 4   ;;  %s1652_s9 = smov %s1142_s10 }
 0x43d   : > { %s1653_s10 = smov %s1146_s11  ;;  %s1654_s11 = smov %s1276_s16 }
 0x43e   : > { %s1655_s12 = smov %s1266_s13  ;;  %28 = sbr.rel (!%p26_p2) target bundleno = 9 (0x9), region = 108 }
 0x443   :  { %765 = vsyncpa [#allocation7], 1 }
 0x444   :  { %767 = vsyncpa [#allocation7 + $0x1], 1 }

</bundles_post_ra>
